<compile_context>
chip_gen: v7x
topology: tpu7x:2x2x1
jax: 0.10.0
libtpu: 0.0.40
codegen_flags: <defaults>
</compile_context>

<pallas_src>
import jax
import jax.numpy as jnp
from jax.experimental import pallas as pl
from jax.experimental.pallas import tpu as pltpu


def _round_up(x, m):
    return ((x + m - 1) // m) * m


def _vmem_limit_bytes():
    """Generation-aware VMEM limit: ~48 MiB on v7x (64 MiB), ~96 MiB on v5e/v6e."""
    try:
        cap = pltpu.get_tpu_info().vmem_capacity_bytes
    except Exception:
        cap = 64 * 1024 * 1024  # assume the smallest generation if query fails
    return int(min(cap * 3 // 4, 100 * 1024 * 1024))


# ---------------------------------------------------------------------------
# Kernels
# ---------------------------------------------------------------------------
def _kernel_resident(x_ref, w1_ref, b1_ref, w2_ref, b2_ref, o_ref):
    # x_ref : (tb, Dp) f32   w1_ref : (Dp, H) bf16   b1_ref : (1, H)  f32
    # w2_ref: (H,  Cp) bf16  b2_ref : (1, Cp) f32    o_ref  : (tb, Cp) bf16
    x = x_ref[...].astype(w1_ref.dtype)                 # in-kernel cast (no extra HBM pass)
    h = jnp.dot(x, w1_ref[...], preferred_element_type=jnp.float32)
    h = jnp.maximum(h + b1_ref[...], 0.0)
    logits = jnp.dot(h.astype(w2_ref.dtype), w2_ref[...],
                     preferred_element_type=jnp.float32) + b2_ref[...]
    out = 1.0 / (1.0 + jnp.exp(-logits))                # exact sigmoid, stays in [0, 1]
    o_ref[...] = out.astype(o_ref.dtype)


def _kernel_streamed(x_ref, w1_ref, b1_ref, w2_ref, b2_ref, o_ref, h_acc):
    # Streaming fallback: K (= D) is the last grid axis, f32 accumulator
    # persists across it, epilogue fires on the final K step.
    k = pl.program_id(1)

    @pl.when(k == 0)
    def _():
        h_acc[...] = jnp.zeros_like(h_acc)

    x = x_ref[...].astype(w1_ref.dtype)
    h_acc[...] += jnp.dot(x, w1_ref[...], preferred_element_type=jnp.float32)

    @pl.when(k == pl.num_programs(1) - 1)
    def _():
        h = jnp.maximum(h_acc[...] + b1_ref[...], 0.0)
        logits = jnp.dot(h.astype(w2_ref.dtype), w2_ref[...],
                         preferred_element_type=jnp.float32) + b2_ref[...]
        out = 1.0 / (1.0 + jnp.exp(-logits))
        o_ref[...] = out.astype(o_ref.dtype)


# ---------------------------------------------------------------------------
# Parameter preparation (hoisted: call once, reuse across forward calls)
# ---------------------------------------------------------------------------
def prepare_params(w1, b1, w2, b2):
    D, H = w1.shape
    C = w2.shape[1]
    Dp = _round_up(D, 128)                 # lane multiple for the x / w1 tiles
    Cp = _round_up(max(C, 128), 128)       # lane-dense output (unmasked vst)

    w1_p = w1.astype(jnp.bfloat16)
    if Dp != D:
        w1_p = jnp.pad(w1_p, ((0, Dp - D), (0, 0)))
    w2_p = w2.astype(jnp.bfloat16)
    if Cp != C:
        w2_p = jnp.pad(w2_p, ((0, 0), (0, Cp - C)))
    b1_p = b1.astype(jnp.float32).reshape(1, H)
    b2_p = b2.astype(jnp.float32).reshape(1, C)
    if Cp != C:
        b2_p = jnp.pad(b2_p, ((0, 0), (0, Cp - C)))

    return dict(w1=w1_p, b1=b1_p, w2=w2_p, b2=b2_p,
                D=D, H=H, C=C, Dp=Dp, Cp=Cp)


# ---------------------------------------------------------------------------
# Forward
# ---------------------------------------------------------------------------
def classifier_forward(x_nchw, params, *, tb=256, tk=1024):
    """Pallas-backed forward: flatten NCHW -> Linear -> ReLU -> Linear -> sigmoid."""
    B = x_nchw.shape[0]
    D, H, C = params["D"], params["H"], params["C"]
    Dp, Cp = params["Dp"], params["Cp"]
    w1_p, b1_p = params["w1"], params["b1"]
    w2_p, b2_p = params["w2"], params["b2"]

    # Flatten like torch .view(B, -1).
    x2d = x_nchw.reshape(B, D).astype(jnp.float32)

    # Batch tile: multiple of 16 (works for bf16 output sublane packing); for
    # large B this yields n_b >= 2 so the "parallel" axis shards across v7x's
    # two TensorCores.
    tb = max(16, min(_round_up(tb, 16), _round_up(B, 16)))
    Bp = _round_up(B, tb)

    # Pad x only on real misalignment (kept f32; the bf16 cast happens in-kernel).
    x_p = x2d
    if Bp != B or Dp != D:
        x_p = jnp.pad(x_p, ((0, Bp - B), (0, Dp - D)))

    n_b = Bp // tb
    vmem_limit = _vmem_limit_bytes()
    out_shape = jax.ShapeDtypeStruct((Bp, Cp), jnp.bfloat16)

    # Per-core VMEM footprint with fully-resident w1 (input specs counted at
    # 2x for double-buffering).
    resident_bytes = (2 * tb * Dp * 4       # x tile, f32
                      + 2 * Dp * H * 2      # w1, bf16
                      + 2 * H * Cp * 2      # w2, bf16
                      + 2 * tb * Cp * 2     # output tile, bf16
                      + 4 * (H + Cp) * 4)   # biases
    use_resident = resident_bytes <= (vmem_limit * 6) // 10

    if use_resident:
        # --- Resident-w1 fast path: no K axis, no accumulator, no re-reads. ---
        cost = pl.CostEstimate(
            flops=2 * Bp * Dp * H + 2 * Bp * H * Cp,
            transcendentals=Bp * Cp,
            bytes_accessed=(Bp * Dp * 4 + Dp * H * 2 + H * Cp * 2
                            + (H + Cp) * 4 + Bp * Cp * 2),
        )
        out_p = pl.pallas_call(
            _kernel_resident,
            out_shape=out_shape,
            grid_spec=pltpu.PrefetchScalarGridSpec(
                num_scalar_prefetch=0,
                grid=(n_b,),
                in_specs=[
                    pl.BlockSpec((tb, Dp), lambda i: (i, 0)),   # x tile
                    pl.BlockSpec((Dp, H), lambda i: (0, 0)),    # w1 resident
                    pl.BlockSpec((1, H), lambda i: (0, 0)),     # b1
                    pl.BlockSpec((H, Cp), lambda i: (0, 0)),    # w2 resident
                    pl.BlockSpec((1, Cp), lambda i: (0, 0)),    # b2
                ],
                out_specs=pl.BlockSpec((tb, Cp), lambda i: (i, 0)),
            ),
            compiler_params=pltpu.CompilerParams(
                dimension_semantics=("parallel",),
                vmem_limit_bytes=vmem_limit,
            ),
            cost_estimate=cost,
        )(x_p, w1_p, b1_p, w2_p, b2_p)
    else:
        # --- Streaming fallback for very large D*H. ---
        tk = max(128, min(_round_up(tk, 128), Dp))
        while Dp % tk != 0:          # Dp is a multiple of 128 -> terminates
            tk -= 128
        n_k = Dp // tk

        cost = pl.CostEstimate(
            flops=2 * Bp * Dp * H + 2 * Bp * H * Cp,
            transcendentals=Bp * Cp,
            bytes_accessed=(Bp * Dp * 4 + n_b * Dp * H * 2 + H * Cp * 2
                            + (H + Cp) * 4 + Bp * Cp * 2),
        )
        out_p = pl.pallas_call(
            _kernel_streamed,
            out_shape=out_shape,
            grid_spec=pltpu.PrefetchScalarGridSpec(
                num_scalar_prefetch=0,
                grid=(n_b, n_k),                                    # reduction axis last
                in_specs=[
                    pl.BlockSpec((tb, tk), lambda i, k: (i, k)),    # x tile
                    pl.BlockSpec((tk, H), lambda i, k: (k, 0)),     # w1 streamed
                    pl.BlockSpec((1, H), lambda i, k: (0, 0)),      # b1
                    pl.BlockSpec((H, Cp), lambda i, k: (0, 0)),     # w2
                    pl.BlockSpec((1, Cp), lambda i, k: (0, 0)),     # b2
                ],
                out_specs=pl.BlockSpec((tb, Cp), lambda i, k: (i, 0)),
                scratch_shapes=[pltpu.VMEM((tb, H), jnp.float32)],
            ),
            compiler_params=pltpu.CompilerParams(
                dimension_semantics=("parallel", "arbitrary"),
                vmem_limit_bytes=vmem_limit,
            ),
            cost_estimate=cost,
        )(x_p, w1_p, b1_p, w2_p, b2_p)

    # Drop batch / class padding.
    return out_p[:B, :C]


def init_params(key, d_in, hidden, n_classes):
    k1, k2, k3, k4 = jax.random.split(key, 4)
    w1 = jax.random.normal(k1, (d_in, hidden), jnp.float32) * (1.0 / jnp.sqrt(d_in))
    b1 = jax.random.normal(k2, (hidden,), jnp.float32) * 0.01
    w2 = jax.random.normal(k3, (hidden, n_classes), jnp.float32) * (1.0 / jnp.sqrt(hidden))
    b2 = jax.random.normal(k4, (n_classes,), jnp.float32) * 0.01
    return w1, b1, w2, b2


if __name__ == "__main__":
    key = jax.random.PRNGKey(0)
    kx, kp = jax.random.split(key)

    # Small shapes consistent with an NCHW image classifier.
    B, C_in, Hs, Ws = 2, 4, 16, 16
    D = C_in * Hs * Ws          # 1024 flattened features
    HIDDEN = 128
    N_CLASSES = 8

    x = jax.random.normal(kx, (B, C_in, Hs, Ws), jnp.float32)
    w1, b1, w2, b2 = init_params(kp, D, HIDDEN, N_CLASSES)

    # Weight cast/pad is hoisted out of the per-call path (done once).
    params = prepare_params(w1, b1, w2, b2)

    out = classifier_forward(x, params)
    out = jax.block_until_ready(out)

    # Pure-JAX f32 reference (kernel uses bf16 matmul operands + bf16 output).
    x2d = x.reshape(B, D)
    ref = jax.nn.sigmoid(jnp.maximum(x2d @ w1 + b1, 0.0) @ w2 + b2)
    assert out.shape == (B, N_CLASSES)
    out_f32 = out.astype(jnp.float32)
    max_err = float(jnp.max(jnp.abs(out_f32 - ref)))
    assert jnp.allclose(out_f32, ref, atol=2e-2, rtol=2e-2), max_err
    assert bool(jnp.all((out_f32 >= 0.0) & (out_f32 <= 1.0)))

    # TODO(synk): the 'softmax' branch of Classfier.func is not exercised here;
    # only the default 'sigmoid' branch is implemented in-kernel.
    print("KERNEL_OK")
</pallas_src>

<mosaic_0001>
module attributes {stable_mosaic.version = 11 : i64} {
  func.func @_kernel_resident(%arg0: i32, %arg1: memref<16x1024xf32, #tpu.memory_space<vmem>>, %arg2: memref<1024x128xbf16, #tpu.memory_space<vmem>>, %arg3: memref<1x128xf32, #tpu.memory_space<vmem>>, %arg4: memref<128x128xbf16, #tpu.memory_space<vmem>>, %arg5: memref<1x128xf32, #tpu.memory_space<vmem>>, %arg6: memref<16x128xbf16, #tpu.memory_space<vmem>>) attributes {dimension_semantics = [#tpu.dimension_semantics<parallel>], iteration_bounds = array<i64: 1>, scalar_prefetch = 0 : i64, scratch_operands = 0 : i64, tpu.core_type = #tpu.core_type<tc>, window_params = [{transform_indices = @transform_0, window_bounds = array<i64: 16, 1024>}, {pipeline_mode = #tpu.pipeline_mode<synchronous>, transform_indices = @transform_1, window_bounds = array<i64: 1024, 128>}, {pipeline_mode = #tpu.pipeline_mode<synchronous>, transform_indices = @transform_2, window_bounds = array<i64: 1, 128>}, {pipeline_mode = #tpu.pipeline_mode<synchronous>, transform_indices = @transform_3, window_bounds = array<i64: 128, 128>}, {pipeline_mode = #tpu.pipeline_mode<synchronous>, transform_indices = @transform_4, window_bounds = array<i64: 1, 128>}, {transform_indices = @transform_5, window_bounds = array<i64: 16, 128>}]} {
    %c0 = arith.constant 0 : index
    %c0_0 = arith.constant 0 : index
    %0 = vector.load %arg1[%c0, %c0_0] : memref<16x1024xf32, #tpu.memory_space<vmem>>, vector<16x1024xf32>
    %1 = arith.truncf %0 : vector<16x1024xf32> to vector<16x1024xbf16>
    %c0_1 = arith.constant 0 : index
    %c0_2 = arith.constant 0 : index
    %2 = vector.load %arg2[%c0_1, %c0_2] : memref<1024x128xbf16, #tpu.memory_space<vmem>>, vector<1024x128xbf16>
    %cst = arith.constant dense<0.000000e+00> : vector<16x128xf32>
    %3 = tpu.matmul %1, %2, %cst {dimension_numbers = #tpu.dot_dimension_numbers<[1], [0], [0], [1], [0, 0, 1, 1], [], []>} : vector<16x1024xbf16>, vector<1024x128xbf16>, vector<16x128xf32> -> vector<16x128xf32>
    %c0_3 = arith.constant 0 : index
    %c0_4 = arith.constant 0 : index
    %4 = vector.load %arg3[%c0_3, %c0_4] : memref<1x128xf32, #tpu.memory_space<vmem>>, vector<1x128xf32>
    %5 = vector.broadcast %4 : vector<1x128xf32> to vector<16x128xf32>
    %6 = arith.addf %3, %5 : vector<16x128xf32>
    %cst_5 = arith.constant 0.000000e+00 : f32
    %7 = vector.broadcast %cst_5 : f32 to vector<16x128xf32>
    %8 = arith.maximumf %6, %7 : vector<16x128xf32>
    %9 = arith.truncf %8 : vector<16x128xf32> to vector<16x128xbf16>
    %c0_6 = arith.constant 0 : index
    %c0_7 = arith.constant 0 : index
    %10 = vector.load %arg4[%c0_6, %c0_7] : memref<128x128xbf16, #tpu.memory_space<vmem>>, vector<128x128xbf16>
    %cst_8 = arith.constant dense<0.000000e+00> : vector<16x128xf32>
    %11 = tpu.matmul %9, %10, %cst_8 {dimension_numbers = #tpu.dot_dimension_numbers<[1], [0], [0], [1], [0, 0, 1, 1], [], []>} : vector<16x128xbf16>, vector<128x128xbf16>, vector<16x128xf32> -> vector<16x128xf32>
    %c0_9 = arith.constant 0 : index
    %c0_10 = arith.constant 0 : index
    %12 = vector.load %arg5[%c0_9, %c0_10] : memref<1x128xf32, #tpu.memory_space<vmem>>, vector<1x128xf32>
    %13 = vector.broadcast %12 : vector<1x128xf32> to vector<16x128xf32>
    %14 = arith.addf %11, %13 : vector<16x128xf32>
    %cst_11 = arith.constant 0.000000e+00 : f32
    %15 = vector.broadcast %cst_11 : f32 to vector<16x128xf32>
    %16 = arith.subf %15, %14 : vector<16x128xf32>
    %17 = math.exp %16 : vector<16x128xf32>
    %cst_12 = arith.constant 1.000000e+00 : f32
    %18 = vector.broadcast %cst_12 : f32 to vector<16x128xf32>
    %19 = arith.addf %18, %17 : vector<16x128xf32>
    %cst_13 = arith.constant 1.000000e+00 : f32
    %20 = vector.broadcast %cst_13 : f32 to vector<16x128xf32>
    %21 = arith.divf %20, %19 : vector<16x128xf32>
    %22 = arith.truncf %21 : vector<16x128xf32> to vector<16x128xbf16>
    %c0_14 = arith.constant 0 : index
    %c0_15 = arith.constant 0 : index
    %23 = vector.load %arg6[%c0_14, %c0_15] : memref<16x128xbf16, #tpu.memory_space<vmem>>, vector<16x128xbf16>
    tpu.vector_store %arg6[%c0_14, %c0_15], %22 {strides = array<i32>} : memref<16x128xbf16, #tpu.memory_space<vmem>>, vector<16x128xbf16>,
    return
  }
  func.func @transform_0(%arg0: i32) -> (i32, i32) {
    %c0_i32 = arith.constant 0 : i32
    %c0_i32_0 = arith.constant 0 : i32
    return %arg0, %c0_i32 : i32, i32
  }
  func.func @transform_1(%arg0: i32) -> (i32, i32) {
    %c0_i32 = arith.constant 0 : i32
    %c0_i32_0 = arith.constant 0 : i32
    %c0_i32_1 = arith.constant 0 : i32
    return %c0_i32, %c0_i32_0 : i32, i32
  }
  func.func @transform_2(%arg0: i32) -> (i32, i32) {
    %c0_i32 = arith.constant 0 : i32
    %c0_i32_0 = arith.constant 0 : i32
    %c0_i32_1 = arith.constant 0 : i32
    return %c0_i32, %c0_i32_0 : i32, i32
  }
  func.func @transform_3(%arg0: i32) -> (i32, i32) {
    %c0_i32 = arith.constant 0 : i32
    %c0_i32_0 = arith.constant 0 : i32
    %c0_i32_1 = arith.constant 0 : i32
    return %c0_i32, %c0_i32_0 : i32, i32
  }
  func.func @transform_4(%arg0: i32) -> (i32, i32) {
    %c0_i32 = arith.constant 0 : i32
    %c0_i32_0 = arith.constant 0 : i32
    %c0_i32_1 = arith.constant 0 : i32
    return %c0_i32, %c0_i32_0 : i32, i32
  }
  func.func @transform_5(%arg0: i32) -> (i32, i32) {
    %c0_i32 = arith.constant 0 : i32
    %c0_i32_0 = arith.constant 0 : i32
    return %arg0, %c0_i32 : i32, i32
  }
}

</mosaic_0001>

<bundles_post_ra>
// kernel: tpu_custom_call.1
= control target key start
LH: loop header
LB: loop body
LE: loop exit
PB: predicated region body
PF: predicated region fallthrough
CT: control target
= control target key end

     0   :  { %10 = vsyncpa [#allocation3], 0  ;;  %s1411_s0 = inlined_call_operand.hbm [shape: f32[16,1024], index: 0, kind: input, shape index: {}]   ;;  %s1412_s1 = inlined_call_operand.hbm [shape: bf16[1024,128], index: 1, kind: input, shape index: {}]   ;;  %s1413_s2 = inlined_call_operand.vmem [shape: f32[1,128], index: 2, kind: input, shape index: {}]   ;;  %s1414_s3 = inlined_call_operand.hbm [shape: bf16[128,128], index: 3, kind: input, shape index: {}]   ;;  %s1415_s4 = inlined_call_operand.vmem [shape: f32[1,128], index: 4, kind: input, shape index: {}]   ;;  %s1416_s5 = inlined_call_operand.hbm [shape: bf16[16,128], index: 5, kind: output, shape index: {}]  }
   0x1   :  { %11 = vsyncpa [#allocation6], 0 }
   0x2   :  { %12 = vsyncpa [#allocation4], 0  ;;  %s1308_s18 = smov [#allocation5]   ;;  %s1214_s22 = scalar_lea.hbm %s1412_s1, 8192 }
   0x3   :  { %s30_s19 = sshll.u32 %s1308_s18, 4  ;;  %p1215_p0 = scmp.ne.s32.totalorder %s1412_s1, %s1214_s22  ;;  %s31_s19 = int_to_ptr.vmem [resolvable:$true] %s30_s19 }
   0x4   :  { %p1218_p1 = scmp.lt.u32.totalorder %s1214_s22, %s1412_s1 }
   0x6   :  { %p1220_p2 = pnand %p1218_p1, %p1215_p0 }
   0x8   :  { %1223 = shalt.err (!%p1220_p2)
}
   0x9   :  { %s1224_s27 = scalar_lea.vmem %s31_s19, 8192  ;;  %p1229_p4 = scmp.lt.s32.totalorder %s31_s19, %s31_s19 }
   0xa   :  { %p1225_p3 = scmp.ne.s32.totalorder %s31_s19, %s1224_s27  ;;  %p1230_p5 = scmp.lt.s32.totalorder %s1224_s27, %s1224_s27 }
   0xc   :  { %p1231_p6 = por %p1230_p5, %p1229_p4 }
   0xe   :  { %p1232_p7 = pnand %p1231_p6, %p1225_p3 }
  0x10   :  { %1235 = shalt.err (!%p1232_p7)
}
  0x11   :  { %s1309_s28 = smov 64   ;;  %s1310_s29 = smov 4  }
  0x12   :  { %36 = dma.hbm_to_vmem [thread:$0]  %s1412_s1, 8192, %s31_s19, [#allocation6], %s1309_s28, %s1309_s28, %s1310_s29  }
  0x13   :  { %s1311_s7 = smov [#allocation2]   ;;  %s1236_s11 = scalar_lea.hbm %s1411_s0, 2048 }
  0x14   :  { %s18_s8 = sshll.u32 %s1311_s7, 4  ;;  %p1237_p8 = scmp.ne.s32.totalorder %s1411_s0, %s1236_s11  ;;  %s19_s8 = int_to_ptr.vmem [resolvable:$true] %s18_s8 }
  0x15   :  { %p1240_p9 = scmp.lt.u32.totalorder %s1236_s11, %s1411_s0 }
  0x17   :  { %p1242_p10 = pnand %p1240_p9, %p1237_p8 }
  0x19   :  { %1245 = shalt.err (!%p1242_p10)
}
  0x1a   :  { %s1246_s16 = scalar_lea.vmem %s19_s8, 2048  ;;  %p1251_p12 = scmp.lt.s32.totalorder %s19_s8, %s19_s8 }
  0x1b   :  { %p1247_p11 = scmp.ne.s32.totalorder %s19_s8, %s1246_s16  ;;  %p1252_p13 = scmp.lt.s32.totalorder %s1246_s16, %s1246_s16 }
  0x1d   :  { %p1253_p0 = por %p1252_p13, %p1251_p12 }
  0x1f   :  { %p1254_p1 = pnand %p1253_p0, %p1247_p11 }
  0x21   :  { %1257 = shalt.err (!%p1254_p1)
}
  0x22   :  { %s1312_s1 = smov 1024   ;;  %s1313_s19 = smov [#allocation7]  }
  0x23   :  { %24 = dma.hbm_to_vmem [thread:$0]  %s1411_s0, 2048, %s19_s8, [#allocation3], %s1312_s1, %s1312_s1, %s1309_s28  }
  0x24   :  { %s44_s20 = sshll.u32 %s1313_s19, 4  ;;  %s1258_s23 = scalar_lea.hbm %s1414_s3, 1024  ;;  %s45_s20 = int_to_ptr.vmem [resolvable:$true] %s44_s20 }
  0x25   :  { %p1259_p2 = scmp.ne.s32.totalorder %s1414_s3, %s1258_s23  ;;  %p1262_p3 = scmp.lt.u32.totalorder %s1258_s23, %s1414_s3 }
  0x27   :  { %p1264_p4 = pnand %p1262_p3, %p1259_p2 }
  0x29   :  { %1267 = shalt.err (!%p1264_p4)
}
  0x2a   :  { %s1268_s30 = scalar_lea.vmem %s45_s20, 1024  ;;  %p1273_p6 = scmp.lt.s32.totalorder %s45_s20, %s45_s20 }
  0x2b   :  { %p1269_p5 = scmp.ne.s32.totalorder %s45_s20, %s1268_s30  ;;  %p1274_p7 = scmp.lt.s32.totalorder %s1268_s30, %s1268_s30 }
  0x2d   :  { %p1275_p8 = por %p1274_p7, %p1273_p6 }
  0x2f   :  { %p1276_p9 = pnand %p1275_p8, %p1269_p5 }
  0x31   :  { %1279 = shalt.err (!%p1276_p9)
}
  0x32   :  { %50 = dma.hbm_to_vmem [thread:$0]  %s1414_s3, 1024, %s45_s20, [#allocation6], %s1309_s28, %s1309_s28, %s1310_s29  }
  0x33   :  { %1302 = dma.done.wait [#allocation3], 2048  }
  0x34   :  { %1303 = vsyncadd [#allocation3], 4294965248 }
  0x35   :  { %1304 = dma.done.wait [#allocation6], 9216  }
  0x36   :  { %1305 = vsyncadd [#allocation6], 4294958080  ;;  %v1134_v0 = vld [vmem:[#allocation5 + $0x40] sm:$0xff]   ;;  %v1138_v4 = vld [vmem:[#allocation5 + $0x48] sm:$0xff]   ;;  %vm1315_vm0 = vmmov 0   ;;  %s1316_s9 = smov [#allocation8]  }
  0x37   :  { %v1135_v1 = vld [vmem:[#allocation5 + $0xc0] sm:$0xff]   ;;  %1008 = vmatprep.subr.bf16.mxu0 %v1134_v0  ;;  %v1139_v5 = vld [vmem:[#allocation5 + $0xc8] sm:$0xff]   ;;  %v1142_v8 = vld [vmem:[#allocation5 + $0x50] sm:$0xff]  }
  0x38   :  { %v1136_v2 = vld [vmem:[#allocation5] sm:$0xff]   ;;  %1030 = vmatprep.subr.bf16.mxu1 %v1135_v1  ;;  %v1140_v6 = vld [vmem:[#allocation5 + $0x8] sm:$0xff]   ;;  %v1143_v9 = vld [vmem:[#allocation5 + $0xd0] sm:$0xff]  }
  0x39   :  { %v1137_v3 = vld [vmem:[#allocation5 + $0x80] sm:$0xff]   ;;  %1009 = vmatpush3.bf16.msra.mxu0 %v1136_v2  ;;  %v1141_v7 = vld [vmem:[#allocation5 + $0x88] sm:$0xff]   ;;  %v1144_v10 = vld [vmem:[#allocation5 + $0x10] sm:$0xff]  }
  0x3a   :  { %1031 = vmatpush3.bf16.msra.mxu1 %v1137_v3  ;;  %1010 = vmatprep.subr.bf16.mxu0 %v1138_v4  ;;  %v1145_v11 = vld [vmem:[#allocation5 + $0x90] sm:$0xff]   ;;  %v1146_v12 = vld [vmem:[#allocation5 + $0x58] sm:$0xff]   ;;  %v1150_v16 = vld [vmem:[#allocation5 + $0x60] sm:$0xff]  }
  0x3b   :  { %1032 = vmatprep.subr.bf16.mxu1 %v1139_v5  ;;  %v1147_v13 = vld [vmem:[#allocation5 + $0xd8] sm:$0xff]   ;;  %v1151_v17 = vld [vmem:[#allocation5 + $0xe0] sm:$0xff]   ;;  %v1154_v20 = vld [vmem:[#allocation5 + $0x68] sm:$0xff]  }
  0x3c   :  { %v1148_v14 = vld [vmem:[#allocation5 + $0x18] sm:$0xff]   ;;  %v1152_v18 = vld [vmem:[#allocation5 + $0x20] sm:$0xff]   ;;  %v1155_v21 = vld [vmem:[#allocation5 + $0xe8] sm:$0xff]  }
  0x3d   :  { %1011 = vmatpush3.bf16.msra.mxu0 %v1140_v6  ;;  %v1149_v15 = vld [vmem:[#allocation5 + $0x98] sm:$0xff]   ;;  %v1153_v19 = vld [vmem:[#allocation5 + $0xa0] sm:$0xff]   ;;  %v1156_v22 = vld [vmem:[#allocation5 + $0x28] sm:$0xff]  }
  0x3e   :  { %1033 = vmatpush3.bf16.msra.mxu1 %v1141_v7  ;;  %1012 = vmatprep.subr.bf16.mxu0 %v1142_v8  ;;  %v1157_v23 = vld [vmem:[#allocation5 + $0xa8] sm:$0xff]   ;;  %v1158_v24 = vld [vmem:[#allocation5 + $0x70] sm:$0xff]   ;;  %v1162_v28 = vld [vmem:[#allocation5 + $0x78] sm:$0xff]  }
  0x3f   :  { %1034 = vmatprep.subr.bf16.mxu1 %v1143_v9  ;;  %v1159_v25 = vld [vmem:[#allocation5 + $0xf0] sm:$0xff]   ;;  %v1163_v29 = vld [vmem:[#allocation5 + $0xf8] sm:$0xff]   ;;  %v64_v32 = vld [vmem:[#allocation2 + $0x8] sm:$0xff] }
  0x40   :  { %v1160_v26 = vld [vmem:[#allocation5 + $0x30] sm:$0xff]   ;;  %v1164_v30 = vld [vmem:[#allocation5 + $0x38] sm:$0xff]   ;;  %v72_v33 = vld [vmem:[#allocation2 + $0x48] sm:$0xff] }
  0x41   :  { %1013 = vmatpush3.bf16.msra.mxu0 %v1144_v10  ;;  %v1161_v27 = vld [vmem:[#allocation5 + $0xb0] sm:$0xff]   ;;  %v1165_v31 = vld [vmem:[#allocation5 + $0xb8] sm:$0xff]   ;;  %v80_v35 = vpack.c.bf16 %v72_v33, %v64_v32  ;;  %v63_v37 = vld [vmem:[#allocation2] sm:$0xff] }
  0x42   :  { %1035 = vmatpush3.bf16.msra.mxu1 %v1145_v11  ;;  %1014 = vmatprep.subr.bf16.mxu0 %v1146_v12  ;;  %v66_v34 = vld [vmem:[#allocation2 + $0x18] sm:$0xff]  ;;  %v71_v38 = vld [vmem:[#allocation2 + $0x40] sm:$0xff]  ;;  %v65_v41 = vld [vmem:[#allocation2 + $0x10] sm:$0xff] }
  0x43   :  { %1036 = vmatprep.subr.bf16.mxu1 %v1147_v13  ;;  %v74_v36 = vld [vmem:[#allocation2 + $0x58] sm:$0xff]  ;;  %v79_v40 = vpack.c.bf16 %v71_v38, %v63_v37  ;;  %v73_v42 = vld [vmem:[#allocation2 + $0x50] sm:$0xff]  ;;  %638 = vmatprep.mubr.bf16.mxu0 %v80_v35  ;;  %v1166_v44 = vld [vmem:[#allocation5 + $0x140] sm:$0xff]  }
  0x44   :  { %v82_v39 = vpack.c.bf16 %v74_v36, %v66_v34  ;;  %v81_v43 = vpack.c.bf16 %v73_v42, %v65_v41  ;;  %v1167_v45 = vld [vmem:[#allocation5 + $0x1c0] sm:$0xff]   ;;  %v1170_v48 = vld [vmem:[#allocation5 + $0x148] sm:$0xff]   ;;  %v1174_v52 = vld [vmem:[#allocation5 + $0x150] sm:$0xff]  }
  0x45   :  { %1015 = vmatpush3.bf16.msra.mxu0 %v1148_v14  ;;  %v1168_v46 = vld [vmem:[#allocation5 + $0x100] sm:$0xff]   ;;  %v1171_v49 = vld [vmem:[#allocation5 + $0x1c8] sm:$0xff]   ;;  %v1175_v53 = vld [vmem:[#allocation5 + $0x1d0] sm:$0xff]  }
  0x46   :  { %1037 = vmatpush3.bf16.msra.mxu1 %v1149_v15  ;;  %1016 = vmatprep.subr.bf16.mxu0 %v1150_v16  ;;  %v1169_v47 = vld [vmem:[#allocation5 + $0x180] sm:$0xff]   ;;  %v1172_v50 = vld [vmem:[#allocation5 + $0x108] sm:$0xff]   ;;  %v1176_v54 = vld [vmem:[#allocation5 + $0x110] sm:$0xff]  }
  0x47   :  { %1038 = vmatprep.subr.bf16.mxu1 %v1151_v17  ;;  %679 = vmatprep.mubr.bf16.mxu1 %v82_v39  ;;  %v1173_v51 = vld [vmem:[#allocation5 + $0x188] sm:$0xff]   ;;  %v1177_v55 = vld [vmem:[#allocation5 + $0x190] sm:$0xff]   ;;  %v1178_v56 = vld [vmem:[#allocation5 + $0x158] sm:$0xff]  }
  0x48   :  { %v1179_v57 = vld [vmem:[#allocation5 + $0x1d8] sm:$0xff]   ;;  %v1182_v60 = vld [vmem:[#allocation5 + $0x160] sm:$0xff]   ;;  %v1186_v0 = vld [vmem:[#allocation5 + $0x168] sm:$0xff]  }
  0x49   :  { %1017 = vmatpush3.bf16.msra.mxu0 %v1152_v18  ;;  %v1180_v58 = vld [vmem:[#allocation5 + $0x118] sm:$0xff]   ;;  %v1183_v61 = vld [vmem:[#allocation5 + $0x1e0] sm:$0xff]   ;;  %v1187_v1 = vld [vmem:[#allocation5 + $0x1e8] sm:$0xff]  }
  0x4a   :  { %1039 = vmatpush3.bf16.msra.mxu1 %v1153_v19  ;;  %1018 = vmatprep.subr.bf16.mxu0 %v1154_v20  ;;  %v1181_v59 = vld [vmem:[#allocation5 + $0x198] sm:$0xff]   ;;  %v1184_v62 = vld [vmem:[#allocation5 + $0x120] sm:$0xff]   ;;  %v1188_v2 = vld [vmem:[#allocation5 + $0x128] sm:$0xff]  }
  0x4b   :  { %1040 = vmatprep.subr.bf16.mxu1 %v1155_v21  ;;  %v1185_v63 = vld [vmem:[#allocation5 + $0x1a0] sm:$0xff]   ;;  %v1189_v3 = vld [vmem:[#allocation5 + $0x1a8] sm:$0xff]   ;;  %v1190_v4 = vld [vmem:[#allocation5 + $0x170] sm:$0xff]  }
  0x4c   :  { %v1191_v5 = vld [vmem:[#allocation5 + $0x1f0] sm:$0xff]   ;;  %v1194_v8 = vld [vmem:[#allocation5 + $0x178] sm:$0xff]   ;;  %v68_v12 = vld [vmem:[#allocation2 + $0x28] sm:$0xff] }
  0x4d   :  { %1019 = vmatpush3.bf16.msra.mxu0 %v1156_v22  ;;  %v1192_v6 = vld [vmem:[#allocation5 + $0x130] sm:$0xff]   ;;  %v1195_v9 = vld [vmem:[#allocation5 + $0x1f8] sm:$0xff]   ;;  %v76_v13 = vld [vmem:[#allocation2 + $0x68] sm:$0xff] }
  0x4e   :  { %1041 = vmatpush3.bf16.msra.mxu1 %v1157_v23  ;;  %1020 = vmatprep.subr.bf16.mxu0 %v1158_v24  ;;  %v1193_v7 = vld [vmem:[#allocation5 + $0x1b0] sm:$0xff]   ;;  %v1196_v10 = vld [vmem:[#allocation5 + $0x138] sm:$0xff]   ;;  %v84_v16 = vpack.c.bf16 %v76_v13, %v68_v12  ;;  %v67_v18 = vld [vmem:[#allocation2 + $0x20] sm:$0xff] }
  0x4f   :  { %1042 = vmatprep.subr.bf16.mxu1 %v1159_v25  ;;  %v1197_v11 = vld [vmem:[#allocation5 + $0x1b8] sm:$0xff]   ;;  %v75_v19 = vld [vmem:[#allocation2 + $0x60] sm:$0xff]  ;;  %v69_v20 = vld [vmem:[#allocation2 + $0x30] sm:$0xff]  ;;  %v1314_v25 = vmov 0.0  }
  0x50   :  { %v70_v14 = vld [vmem:[#allocation2 + $0x38] sm:$0xff]  ;;  %v83_v21 = vpack.c.bf16 %v75_v19, %v67_v18  ;;  %v77_v22 = vld [vmem:[#allocation2 + $0x70] sm:$0xff]  ;;  %v1198_v24 = vld [vmem:[#allocation7] sm:$0xff]  }
  0x51   :  { %1021 = vmatpush3.bf16.msra.mxu0 %v1160_v26  ;;  %v78_v15 = vld [vmem:[#allocation2 + $0x78] sm:$0xff]  ;;  %v85_v23 = vpack.c.bf16 %v77_v22, %v69_v20  ;;  %v1199_v26 = vld [vmem:[#allocation7 + $0x8] sm:$0xff]   ;;  %v925_v35 = vld [vmem:[%s1413_s2] ss:$0 sm:$0xff] }
  0x52   :  { %1043 = vmatpush3.bf16.msra.mxu1 %v1161_v27  ;;  %1022 = vmatprep.subr.bf16.mxu0 %v1162_v28  ;;  %v86_v17 = vpack.c.bf16 %v78_v15, %v70_v14  ;;  %v1200_v27 = vld [vmem:[#allocation7 + $0x10] sm:$0xff]   ;;  %v1201_v28 = vld [vmem:[#allocation7 + $0x18] sm:$0xff]  }
  0x53   :  { %1044 = vmatprep.subr.bf16.mxu1 %v1163_v29  ;;  %v1202_v29 = vld [vmem:[#allocation7 + $0x20] sm:$0xff]   ;;  %v1205_v32 = vld [vmem:[#allocation7 + $0x38] sm:$0xff]  }
  0x55   :  { %1023 = vmatpush3.bf16.msra.mxu0 %v1164_v30  ;;  %v1203_v30 = vld [vmem:[#allocation7 + $0x28] sm:$0xff]  }
  0x56   :  { %1045 = vmatpush3.bf16.msra.mxu1 %v1165_v31  ;;  %1052 = vmatprep.subr.bf16.mxu0 %v1166_v44  ;;  %v1204_v31 = vld [vmem:[#allocation7 + $0x30] sm:$0xff]  }
  0x57   :  { %1074 = vmatprep.subr.bf16.mxu1 %v1167_v45 }
  0x58   :  { %639 = vmatmul.mubr.bf16.vlgmr.msra.gmra.mrb[0].mxu0 %v79_v40 }
  0x59   :  { %680 = vmatmul.mubr.bf16.vlgmr.msra.gmra.mrb[0].mxu1 %v81_v43  ;;  %1053 = vmatpush3.bf16.msra.mxu0 %v1168_v46 }
  0x5a   :  { %1075 = vmatpush3.bf16.msra.mxu1 %v1169_v47  ;;  %1054 = vmatprep.subr.bf16.mxu0 %v1170_v48 }
  0x5b   :  { %1076 = vmatprep.subr.bf16.mxu1 %v1171_v49  ;;  %720 = vmatprep.mubr.bf16.mxu0 %v84_v16 }
  0x5c   :  { %761 = vmatprep.mubr.bf16.mxu1 %v86_v17 }
  0x5d   :  { %1055 = vmatpush3.bf16.msra.mxu0 %v1172_v50 }
  0x5e   :  { %1077 = vmatpush3.bf16.msra.mxu1 %v1173_v51  ;;  %1056 = vmatprep.subr.bf16.mxu0 %v1174_v52 }
  0x5f   :  { %1078 = vmatprep.subr.bf16.mxu1 %v1175_v53 }
  0x61   :  { %1057 = vmatpush3.bf16.msra.mxu0 %v1176_v54 }
  0x62   :  { %1079 = vmatpush3.bf16.msra.mxu1 %v1177_v55  ;;  %1058 = vmatprep.subr.bf16.mxu0 %v1178_v56 }
  0x63   :  { %1080 = vmatprep.subr.bf16.mxu1 %v1179_v57 }
  0x65   :  { %1059 = vmatpush3.bf16.msra.mxu0 %v1180_v58 }
  0x66   :  { %1081 = vmatpush3.bf16.msra.mxu1 %v1181_v59  ;;  %1060 = vmatprep.subr.bf16.mxu0 %v1182_v60 }
  0x67   :  { %1082 = vmatprep.subr.bf16.mxu1 %v1183_v61 }
  0x69   :  { %1061 = vmatpush3.bf16.msra.mxu0 %v1184_v62 }
  0x6a   :  { %1083 = vmatpush3.bf16.msra.mxu1 %v1185_v63  ;;  %1062 = vmatprep.subr.bf16.mxu0 %v1186_v0 }
  0x6b   :  { %1084 = vmatprep.subr.bf16.mxu1 %v1187_v1 }
  0x6d   :  { %1063 = vmatpush3.bf16.msra.mxu0 %v1188_v2 }
  0x6e   :  { %1085 = vmatpush3.bf16.msra.mxu1 %v1189_v3  ;;  %1064 = vmatprep.subr.bf16.mxu0 %v1190_v4 }
  0x6f   :  { %1086 = vmatprep.subr.bf16.mxu1 %v1191_v5  ;;  %v990_v5 = vld [vmem:[%s1415_s4] ss:$0 sm:$0xff]  ;;  %s912_s4 = sshll.u32 %s1316_s9, 4  ;;  %s913_s4 = int_to_ptr.vmem [resolvable:$true] %s912_s4 }
  0x70   :  { %s1280_s10 = scalar_lea.vmem %s913_s4, 128  ;;  %p1285_p11 = scmp.lt.s32.totalorder %s913_s4, %s913_s4 }
  0x71   :  { %1065 = vmatpush3.bf16.msra.mxu0 %v1192_v6  ;;  %p1281_p10 = scmp.ne.s32.totalorder %s913_s4, %s1280_s10  ;;  %p1286_p12 = scmp.lt.s32.totalorder %s1280_s10, %s1280_s10 }
  0x72   :  { %1087 = vmatpush3.bf16.msra.mxu1 %v1193_v7  ;;  %1066 = vmatprep.subr.bf16.mxu0 %v1194_v8 }
  0x73   :  { %1088 = vmatprep.subr.bf16.mxu1 %v1195_v9  ;;  %p1287_p13 = por %p1286_p12, %p1285_p11 }
  0x75   :  { %1067 = vmatpush3.bf16.msra.mxu0 %v1196_v10  ;;  %p1288_p0 = pnand %p1287_p13, %p1281_p10 }
  0x76   :  { %1089 = vmatpush3.bf16.msra.mxu1 %v1197_v11  ;;  %1105 = vmatprep.subr.bf16.mxu0 %v1314_v25 }
  0x78   :  { %721 = vmatmul.mubr.bf16.vlgmr.msra.gmra.mrb[4].mxu0 %v83_v21 }
  0x79   :  { %762 = vmatmul.mubr.bf16.vlgmr.msra.gmra.mrb[4].mxu1 %v85_v23  ;;  %1106 = vmatpush3.bf16.msra.mxu0 %v1198_v24 }
  0x7a   :  { %1107 = vmatprep.subr.bf16.mxu0 %v1314_v25  ;;  %1121 = vmatprep.mubr.msk.bf16.mxu0 %vm1315_vm0, %v1314_v25 }
  0x7d   :  { %1108 = vmatpush3.bf16.msra.mxu0 %v1199_v26 }
  0x7e   :  { %1109 = vmatprep.subr.bf16.mxu0 %v1314_v25 }
  0x81   :  { %1110 = vmatpush3.bf16.msra.mxu0 %v1200_v27 }
  0x82   :  { %1111 = vmatprep.subr.bf16.mxu0 %v1314_v25 }
  0x85   :  { %1112 = vmatpush3.bf16.msra.mxu0 %v1201_v28 }
  0x86   :  { %1113 = vmatprep.subr.bf16.mxu0 %v1314_v25 }
  0x89   :  { %1114 = vmatpush3.bf16.msra.mxu0 %v1202_v29 }
  0x8a   :  { %1115 = vmatprep.subr.bf16.mxu0 %v1314_v25 }
  0x8d   :  { %1116 = vmatpush3.bf16.msra.mxu0 %v1203_v30 }
  0x8e   :  { %1117 = vmatprep.subr.bf16.mxu0 %v1314_v25 }
  0x91   :  { %1118 = vmatpush3.bf16.msra.mxu0 %v1204_v31 }
  0x92   :  { %1119 = vmatprep.subr.bf16.mxu0 %v1314_v25 }
  0x95   :  { %1120 = vmatpush3.bf16.msra.mxu0 %v1205_v32 }
 0x12b   :  { %v1024_v33 = vpop.f32.mrb[0].mxu0 }
 0x12c   :  { %v1046_v34 = vpop.f32.mrb[0].mxu1  ;;  %v1025_v36 = vpop.f32.mrb[1].mxu0 }
 0x12d   :  { %v1026_v37 = vadd.f32 %v1025_v36, %v1024_v33  ;;  %v1047_v38 = vpop.f32.mrb[1].mxu1  ;;  %v1027_v39 = vpop.f32.mrb[2].mxu0 }
 0x12e   :  { %v1048_v40 = vadd.f32 %v1047_v38, %v1046_v34  ;;  %v1049_v41 = vpop.f32.mrb[2].mxu1  ;;  %v1028_v42 = vpop.f32.mrb[3].mxu0 }
 0x12f   :  { %v641_v43 = vadd.f32 %v1026_v37, %v925_v35  ;;  %v1029_v44 = vadd.f32 %v1028_v42, %v1027_v39  ;;  %v1050_v45 = vpop.f32.mrb[3].mxu1 }
 0x130   :  { %v1051_v46 = vadd.f32 %v1050_v45, %v1049_v41 }
 0x131   :  { %v682_v47 = vadd.f32 %v1048_v40, %v641_v43  ;;  %v644_v48 = vadd.f32 %v1029_v44, %v925_v35 }
 0x133   :  { %v685_v49 = vadd.f32 %v1051_v46, %v644_v48 }
 0x14b   :  { %v1068_v50 = vpop.f32.mrb[4].mxu0 }
 0x14c   :  { %v1090_v51 = vpop.f32.mrb[4].mxu1  ;;  %v1069_v52 = vpop.f32.mrb[5].mxu0 }
 0x14d   :  { %v1070_v53 = vadd.f32 %v1069_v52, %v1068_v50  ;;  %v1091_v54 = vpop.f32.mrb[5].mxu1  ;;  %v1071_v55 = vpop.f32.mrb[6].mxu0 }
 0x14e   :  { %v1092_v56 = vadd.f32 %v1091_v54, %v1090_v51  ;;  %v1093_v57 = vpop.f32.mrb[6].mxu1  ;;  %v1072_v58 = vpop.f32.mrb[7].mxu0 }
 0x14f   :  { %v723_v59 = vadd.f32 %v1070_v53, %v682_v47  ;;  %v1073_v60 = vadd.f32 %v1072_v58, %v1071_v55  ;;  %v1094_v61 = vpop.f32.mrb[7].mxu1 }
 0x150   :  { %v1095_v62 = vadd.f32 %v1094_v61, %v1093_v57 }
 0x151   :  { %v764_v63 = vadd.f32 %v1092_v56, %v723_v59  ;;  %v726_v0 = vadd.f32 %v1073_v60, %v685_v49 }
 0x153   :  { %v767_v1 = vadd.f32 %v1095_v62, %v726_v0  ;;  %v770_v2 = vmax.f32 %v764_v63, 0.0 }
 0x155   :  { %v771_v3 = vmax.f32 %v767_v1, 0.0 }
 0x157   :  { %v772_v4 = vpack.c.bf16 %v771_v3, %v770_v2 }
 0x159   :  { %1122 = vmatmul.mubr.bf16.vlgmr.msra.gmra.mrb[8].mxu0 %v772_v4 }
 0x22c   :  { %v878_v6 = vpop.f32.mrb[8].mxu0 }
 0x22d   :  { %v879_v7 = vadd.f32 %v990_v5, %v878_v6  ;;  %v1123_v8 = vpop.f32.mrb[9].mxu0 }
 0x22e   :  { %v881_v9 = vpop.f32.mrb[10].mxu0 }
 0x22f   :  { %v885_v10 = vsub.f32 0.0, %v879_v7  ;;  %v882_v11 = vadd.f32 %v990_v5, %v881_v9  ;;  %v1124_v12 = vpop.f32.mrb[11].mxu0 }
 0x231   :  { %v887_v13 = vmul.f32 1.442695, %v885_v10  ;;  %v886_v14 = vsub.f32 0.0, %v882_v11 }
 0x233   :  { %1206 = vpow2.f32 %v887_v13  ;;  %v889_v15 = vmul.f32 1.442695, %v886_v14 }
 0x235   :  { %1208 = vpow2.f32 %v889_v15 }
 0x23d   :  { %v1207_v16 = vpop.eup %1206 }
 0x23e   :  { %v891_v17 = vadd.f32 1.0, %v1207_v16 }
 0x23f   :  { %v1209_v18 = vpop.eup %1208 }
 0x240   :  { %v892_v19 = vadd.f32 1.0, %v1209_v18  ;;  %1210 = vrcp.f32 %v891_v17 }
 0x242   :  { %1212 = vrcp.f32 %v892_v19 }
 0x24a   :  { %v1211_v20 = vpop.eup %1210 }
 0x24c   :  { %v1213_v21 = vpop.eup %1212 }
 0x24d   :  { %v1006_v22 = vpack.c.bf16 %v1213_v21, %v1211_v20 }
 0x24f   :  { %1007 = vst [vmem:[#allocation8] sm:$0xff] %v1006_v22  }
 0x250   :  { %1291 = shalt.err (!%p1288_p0)
}
 0x251   :  { %s1292_s13 = scalar_lea.hbm %s1416_s5, 128 }
 0x252   :  { %p1293_p1 = scmp.ne.s32.totalorder %s1416_s5, %s1292_s13  ;;  %p1296_p2 = scmp.lt.u32.totalorder %s1292_s13, %s1416_s5 }
 0x254   :  { %p1298_p3 = pnand %p1296_p2, %p1293_p1 }
 0x256   :  { %1301 = shalt.err (!%p1298_p3)
}
 0x257   :  { %918 = dma.vmem_to_hbm [thread:$0]  %s913_s4, 128, %s1416_s5, [#allocation4], %s1309_s28, %s1309_s28, %s1310_s29  }
 0x258   :  { %1306 = dma.done.wait [#allocation4], 128  }
 0x259   :  { %1307 = vsyncadd [#allocation4], 4294967168 }
 0x25a   :  { %922 = vsyncpa [#allocation3], 1 }
 0x25b   :  { %923 = vsyncpa [#allocation6], 1 }
 0x25c   :  { %924 = vsyncpa [#allocation4], 1 }

</bundles_post_ra>
